<compile_context>
chip_gen: v5e
topology: v5e:2x2
jax: 0.10.0
libtpu: 0.0.40
codegen_flags: <defaults>
</compile_context>

<pallas_src>
import jax
import jax.numpy as jnp
from jax import lax
from jax.experimental import pallas as pl
from jax.experimental.pallas import tpu as pltpu


_LAYER_DIMS = [(150, 64), (64, 64), (64, 32), (32, 32), (32, 1)]
_IN_FEATURES = 150


def _round_up(n, m):
    return ((n + m - 1) // m) * m


def _mlp_kernel(x_ref,
                w1_ref, b1_ref,
                w2_ref, b2_ref,
                w3_ref, b3_ref,
                w4_ref, b4_ref,
                w5t_ref, b5_ref,
                o_ref):
    """Fused 5-layer MLP forward for one (TM, 150) batch tile.

    - dot inputs are bf16 (native MXU), accumulation in f32
    - bias / ReLU / sigmoid in f32 on the VPU/EUP
    - layer 5 uses w5 transposed (1, 32) and contracts against the last dim
      of h (TM, 32) -> a (1, TM) lane-dense result, stored unmasked.
    """
    x = x_ref[...]                                              # (TM, 150) bf16

    h = jnp.dot(x, w1_ref[...],
                preferred_element_type=jnp.float32) + b1_ref[...]
    h = jnp.maximum(h, 0.0)
    h = jnp.dot(h.astype(jnp.bfloat16), w2_ref[...],
                preferred_element_type=jnp.float32) + b2_ref[...]
    h = jnp.maximum(h, 0.0)
    h = jnp.dot(h.astype(jnp.bfloat16), w3_ref[...],
                preferred_element_type=jnp.float32) + b3_ref[...]
    h = jnp.maximum(h, 0.0)
    h = jnp.dot(h.astype(jnp.bfloat16), w4_ref[...],
                preferred_element_type=jnp.float32) + b4_ref[...]
    h = jnp.maximum(h, 0.0)                                     # (TM, 32) f32

    # Layer 5, transposed: (1, 32) x (TM, 32) contracting dim 1 of both
    # -> (1, TM), lane-dense.
    y = lax.dot_general(w5t_ref[...], h.astype(jnp.bfloat16),
                        dimension_numbers=(((1,), (1,)), ((), ())),
                        preferred_element_type=jnp.float32)
    y = y + b5_ref[...]                                         # (1,1) -> (1, TM)
    o_ref[...] = jax.nn.sigmoid(y)[None].astype(o_ref.dtype)    # (1, 1, TM)


def _pick_tiling(batch, block_rows):
    """Pick (TM, num_tiles, B_pad) minimizing padding while keeping tiles
    large and lane/sublane aligned."""
    num_tiles = max(1, -(-batch // block_rows))          # ceil(B / block_rows)
    tm_raw = -(-batch // num_tiles)                      # ceil(B / num_tiles)
    align = 128 if tm_raw >= 128 else 8                  # lane- vs sublane-align
    tm = _round_up(max(tm_raw, 1), align)
    return tm, num_tiles, tm * num_tiles


def mlp_forward(x, params, *, block_rows=4096):
    """Run the fused, batch-tiled MLP kernel.

    x: (B, 150) float32
    params: dict of transposed weights w1..w5 (in, out) and biases b1..b5 (1, out)
    Returns (B, 1) float32 probabilities.
    """
    B = x.shape[0]
    TM, num_tiles, B_pad = _pick_tiling(B, block_rows)

    # bf16 at the HBM boundary halves x read traffic and feeds the MXU natively.
    x_bf16 = x.astype(jnp.bfloat16)
    if B_pad != B:
        x_bf16 = jnp.pad(x_bf16, ((0, B_pad - B), (0, 0)))

    w1 = params["w1"].astype(jnp.bfloat16)
    w2 = params["w2"].astype(jnp.bfloat16)
    w3 = params["w3"].astype(jnp.bfloat16)
    w4 = params["w4"].astype(jnp.bfloat16)
    w5t = params["w5"].T.astype(jnp.bfloat16)       # (1, 32)
    b1 = params["b1"].astype(jnp.float32)
    b2 = params["b2"].astype(jnp.float32)
    b3 = params["b3"].astype(jnp.float32)
    b4 = params["b4"].astype(jnp.float32)
    b5 = params["b5"].astype(jnp.float32)           # (1, 1)

    def resident(a):
        # Constant block index -> weights/biases stay VMEM-resident across grid.
        nd = a.ndim
        return pl.BlockSpec(a.shape, lambda i, _nd=nd: (0,) * _nd)

    flops_per_row = 2 * sum(fi * fo for fi, fo in _LAYER_DIMS)
    weight_bytes = sum(fi * fo * 2 + fo * 4 for fi, fo in _LAYER_DIMS)
    cost = pl.CostEstimate(
        flops=flops_per_row * B_pad,
        transcendentals=B_pad,                       # sigmoid exp per row
        bytes_accessed=B_pad * (_IN_FEATURES * 2 + 4) + weight_bytes,
    )

    operands = [x_bf16, w1, b1, w2, b2, w3, b3, w4, b4, w5t, b5]
    in_specs = [pl.BlockSpec((TM, _IN_FEATURES), lambda i: (i, 0))]
    for a in operands[1:]:
        in_specs.append(resident(a))

    out = pl.pallas_call(
        _mlp_kernel,
        out_shape=jax.ShapeDtypeStruct((num_tiles, 1, TM), jnp.float32),
        grid=(num_tiles,),
        in_specs=in_specs,
        out_specs=pl.BlockSpec((1, 1, TM), lambda i: (i, 0, 0)),
        compiler_params=pltpu.CompilerParams(
            dimension_semantics=("parallel",),
            vmem_limit_bytes=32 << 20,
        ),
        cost_estimate=cost,
    )(*operands)

    # (num_tiles, 1, TM) -> (B_pad, 1) -> strip batch padding.
    return out.reshape(B_pad, 1)[:B]


def init_params(key):
    """nn.Linear default init: U(-1/sqrt(fan_in), 1/sqrt(fan_in)).

    Weights stored transposed (in, out); biases stored (1, out).
    """
    params = {}
    keys = jax.random.split(key, 2 * len(_LAYER_DIMS))
    for i, (fan_in, fan_out) in enumerate(_LAYER_DIMS):
        bound = 1.0 / jnp.sqrt(fan_in)
        wk, bk = keys[2 * i], keys[2 * i + 1]
        params[f"w{i+1}"] = jax.random.uniform(
            wk, (fan_in, fan_out), jnp.float32, minval=-bound, maxval=bound)
        params[f"b{i+1}"] = jax.random.uniform(
            bk, (1, fan_out), jnp.float32, minval=-bound, maxval=bound)
    return params


def mlp_reference(x, params):
    """Plain-JAX f32 reference for correctness checking."""
    h = x
    for i in range(1, 5):
        h = jnp.maximum(h @ params[f"w{i}"] + params[f"b{i}"], 0.0)
    h = h @ params["w5"] + params["b5"]
    return jax.nn.sigmoid(h)


if __name__ == "__main__":
    key = jax.random.PRNGKey(0)
    pkey, xkey, xkey2, xkey3 = jax.random.split(key, 4)
    params = init_params(pkey)

    # Check 1: batch not a multiple of 8 -> exercises batch padding (1 tile, TM=8).
    B = 6
    x = jax.random.normal(xkey, (B, _IN_FEATURES), jnp.float32)
    out = jax.block_until_ready(mlp_forward(x, params))
    ref = mlp_reference(x, params)
    assert out.shape == (B, 1), out.shape
    err = float(jnp.max(jnp.abs(out - ref)))
    # bf16 matmul inputs (f32 accumulate) -> relaxed tolerance vs f32 reference.
    assert err < 5e-2, f"max abs err {err}"

    # Check 2: multi-tile grid path with a small forced tile size (3 tiles of 16).
    B2 = 40
    x2 = jax.random.normal(xkey2, (B2, _IN_FEATURES), jnp.float32)
    out2 = jax.block_until_ready(mlp_forward(x2, params, block_rows=16))
    ref2 = mlp_reference(x2, params)
    assert out2.shape == (B2, 1), out2.shape
    err2 = float(jnp.max(jnp.abs(out2 - ref2)))
    assert err2 < 5e-2, f"max abs err (multi-tile) {err2}"

    # Check 3: 128-aligned lane-dense tile path (1 tile, TM=512).
    B3 = 512
    x3 = jax.random.normal(xkey3, (B3, _IN_FEATURES), jnp.float32)
    out3 = jax.block_until_ready(mlp_forward(x3, params))
    ref3 = mlp_reference(x3, params)
    assert out3.shape == (B3, 1), out3.shape
    err3 = float(jnp.max(jnp.abs(out3 - ref3)))
    assert err3 < 5e-2, f"max abs err (lane-dense tile) {err3}"

    print("KERNEL_OK")
</pallas_src>

<mosaic_0001>
module attributes {stable_mosaic.version = 11 : i64} {
  func.func @_mlp_kernel(%arg0: i32, %arg1: memref<8x150xbf16, #tpu.memory_space<vmem>>, %arg2: memref<150x64xbf16, #tpu.memory_space<vmem>>, %arg3: memref<1x64xf32, #tpu.memory_space<vmem>>, %arg4: memref<64x64xbf16, #tpu.memory_space<vmem>>, %arg5: memref<1x64xf32, #tpu.memory_space<vmem>>, %arg6: memref<64x32xbf16, #tpu.memory_space<vmem>>, %arg7: memref<1x32xf32, #tpu.memory_space<vmem>>, %arg8: memref<32x32xbf16, #tpu.memory_space<vmem>>, %arg9: memref<1x32xf32, #tpu.memory_space<vmem>>, %arg10: memref<1x32xbf16, #tpu.memory_space<vmem>>, %arg11: memref<1x1xf32, #tpu.memory_space<vmem>>, %arg12: memref<1x1x8xf32, #tpu.memory_space<vmem>>) attributes {dimension_semantics = [#tpu.dimension_semantics<parallel>], iteration_bounds = array<i64: 1>, scalar_prefetch = 0 : i64, scratch_operands = 0 : i64, tpu.core_type = #tpu.core_type<tc>, window_params = [{transform_indices = @transform_0, window_bounds = array<i64: 8, 150>}, {pipeline_mode = #tpu.pipeline_mode<synchronous>, transform_indices = @transform_1, window_bounds = array<i64: 150, 64>}, {pipeline_mode = #tpu.pipeline_mode<synchronous>, transform_indices = @transform_2, window_bounds = array<i64: 1, 64>}, {pipeline_mode = #tpu.pipeline_mode<synchronous>, transform_indices = @transform_3, window_bounds = array<i64: 64, 64>}, {pipeline_mode = #tpu.pipeline_mode<synchronous>, transform_indices = @transform_4, window_bounds = array<i64: 1, 64>}, {pipeline_mode = #tpu.pipeline_mode<synchronous>, transform_indices = @transform_5, window_bounds = array<i64: 64, 32>}, {pipeline_mode = #tpu.pipeline_mode<synchronous>, transform_indices = @transform_6, window_bounds = array<i64: 1, 32>}, {pipeline_mode = #tpu.pipeline_mode<synchronous>, transform_indices = @transform_7, window_bounds = array<i64: 32, 32>}, {pipeline_mode = #tpu.pipeline_mode<synchronous>, transform_indices = @transform_8, window_bounds = array<i64: 1, 32>}, {pipeline_mode = #tpu.pipeline_mode<synchronous>, transform_indices = @transform_9, window_bounds = array<i64: 1, 32>}, {pipeline_mode = #tpu.pipeline_mode<synchronous>, transform_indices = @transform_10, window_bounds = array<i64: 1, 1>}, {transform_indices = @transform_11, window_bounds = array<i64: 1, 1, 8>}]} {
    %c0 = arith.constant 0 : index
    %c0_0 = arith.constant 0 : index
    %0 = vector.load %arg1[%c0, %c0_0] : memref<8x150xbf16, #tpu.memory_space<vmem>>, vector<8x150xbf16>
    %c0_1 = arith.constant 0 : index
    %c0_2 = arith.constant 0 : index
    %1 = vector.load %arg2[%c0_1, %c0_2] : memref<150x64xbf16, #tpu.memory_space<vmem>>, vector<150x64xbf16>
    %cst = arith.constant dense<0.000000e+00> : vector<8x64xf32>
    %2 = tpu.matmul %0, %1, %cst {dimension_numbers = #tpu.dot_dimension_numbers<[1], [0], [0], [1], [0, 0, 1, 1], [], []>} : vector<8x150xbf16>, vector<150x64xbf16>, vector<8x64xf32> -> vector<8x64xf32>
    %c0_3 = arith.constant 0 : index
    %c0_4 = arith.constant 0 : index
    %3 = vector.load %arg3[%c0_3, %c0_4] : memref<1x64xf32, #tpu.memory_space<vmem>>, vector<1x64xf32>
    %4 = vector.broadcast %3 : vector<1x64xf32> to vector<8x64xf32>
    %5 = arith.addf %2, %4 : vector<8x64xf32>
    %cst_5 = arith.constant 0.000000e+00 : f32
    %6 = vector.broadcast %cst_5 : f32 to vector<8x64xf32>
    %7 = arith.maximumf %5, %6 : vector<8x64xf32>
    %8 = arith.truncf %7 : vector<8x64xf32> to vector<8x64xbf16>
    %c0_6 = arith.constant 0 : index
    %c0_7 = arith.constant 0 : index
    %9 = vector.load %arg4[%c0_6, %c0_7] : memref<64x64xbf16, #tpu.memory_space<vmem>>, vector<64x64xbf16>
    %cst_8 = arith.constant dense<0.000000e+00> : vector<8x64xf32>
    %10 = tpu.matmul %8, %9, %cst_8 {dimension_numbers = #tpu.dot_dimension_numbers<[1], [0], [0], [1], [0, 0, 1, 1], [], []>} : vector<8x64xbf16>, vector<64x64xbf16>, vector<8x64xf32> -> vector<8x64xf32>
    %c0_9 = arith.constant 0 : index
    %c0_10 = arith.constant 0 : index
    %11 = vector.load %arg5[%c0_9, %c0_10] : memref<1x64xf32, #tpu.memory_space<vmem>>, vector<1x64xf32>
    %12 = vector.broadcast %11 : vector<1x64xf32> to vector<8x64xf32>
    %13 = arith.addf %10, %12 : vector<8x64xf32>
    %cst_11 = arith.constant 0.000000e+00 : f32
    %14 = vector.broadcast %cst_11 : f32 to vector<8x64xf32>
    %15 = arith.maximumf %13, %14 : vector<8x64xf32>
    %16 = arith.truncf %15 : vector<8x64xf32> to vector<8x64xbf16>
    %c0_12 = arith.constant 0 : index
    %c0_13 = arith.constant 0 : index
    %17 = vector.load %arg6[%c0_12, %c0_13] : memref<64x32xbf16, #tpu.memory_space<vmem>>, vector<64x32xbf16>
    %cst_14 = arith.constant dense<0.000000e+00> : vector<8x32xf32>
    %18 = tpu.matmul %16, %17, %cst_14 {dimension_numbers = #tpu.dot_dimension_numbers<[1], [0], [0], [1], [0, 0, 1, 1], [], []>} : vector<8x64xbf16>, vector<64x32xbf16>, vector<8x32xf32> -> vector<8x32xf32>
    %c0_15 = arith.constant 0 : index
    %c0_16 = arith.constant 0 : index
    %19 = vector.load %arg7[%c0_15, %c0_16] : memref<1x32xf32, #tpu.memory_space<vmem>>, vector<1x32xf32>
    %20 = vector.broadcast %19 : vector<1x32xf32> to vector<8x32xf32>
    %21 = arith.addf %18, %20 : vector<8x32xf32>
    %cst_17 = arith.constant 0.000000e+00 : f32
    %22 = vector.broadcast %cst_17 : f32 to vector<8x32xf32>
    %23 = arith.maximumf %21, %22 : vector<8x32xf32>
    %24 = arith.truncf %23 : vector<8x32xf32> to vector<8x32xbf16>
    %c0_18 = arith.constant 0 : index
    %c0_19 = arith.constant 0 : index
    %25 = vector.load %arg8[%c0_18, %c0_19] : memref<32x32xbf16, #tpu.memory_space<vmem>>, vector<32x32xbf16>
    %cst_20 = arith.constant dense<0.000000e+00> : vector<8x32xf32>
    %26 = tpu.matmul %24, %25, %cst_20 {dimension_numbers = #tpu.dot_dimension_numbers<[1], [0], [0], [1], [0, 0, 1, 1], [], []>} : vector<8x32xbf16>, vector<32x32xbf16>, vector<8x32xf32> -> vector<8x32xf32>
    %c0_21 = arith.constant 0 : index
    %c0_22 = arith.constant 0 : index
    %27 = vector.load %arg9[%c0_21, %c0_22] : memref<1x32xf32, #tpu.memory_space<vmem>>, vector<1x32xf32>
    %28 = vector.broadcast %27 : vector<1x32xf32> to vector<8x32xf32>
    %29 = arith.addf %26, %28 : vector<8x32xf32>
    %cst_23 = arith.constant 0.000000e+00 : f32
    %30 = vector.broadcast %cst_23 : f32 to vector<8x32xf32>
    %31 = arith.maximumf %29, %30 : vector<8x32xf32>
    %c0_24 = arith.constant 0 : index
    %c0_25 = arith.constant 0 : index
    %32 = vector.load %arg10[%c0_24, %c0_25] : memref<1x32xbf16, #tpu.memory_space<vmem>>, vector<1x32xbf16>
    %33 = arith.truncf %31 : vector<8x32xf32> to vector<8x32xbf16>
    %cst_26 = arith.constant dense<0.000000e+00> : vector<1x8xf32>
    %34 = tpu.matmul %32, %33, %cst_26 {dimension_numbers = #tpu.dot_dimension_numbers<[1], [1], [0], [0], [0, 0, 1, 0], [], []>} : vector<1x32xbf16>, vector<8x32xbf16>, vector<1x8xf32> -> vector<1x8xf32>
    %c0_27 = arith.constant 0 : index
    %c0_28 = arith.constant 0 : index
    %35 = vector.load %arg11[%c0_27, %c0_28] : memref<1x1xf32, #tpu.memory_space<vmem>>, vector<1x1xf32>
    %36 = vector.broadcast %35 : vector<1x1xf32> to vector<1x8xf32>
    %37 = arith.addf %34, %36 : vector<1x8xf32>
    %38 = arith.negf %37 : vector<1x8xf32>
    %39 = math.exp %38 : vector<1x8xf32>
    %cst_29 = arith.constant 1.000000e+00 : f32
    %40 = vector.broadcast %cst_29 : f32 to vector<1x8xf32>
    %41 = arith.addf %40, %39 : vector<1x8xf32>
    %42 = arith.divf %40, %41 : vector<1x8xf32>
    %43 = vector.shape_cast %42 : vector<1x8xf32> to vector<1x1x8xf32>
    %c0_30 = arith.constant 0 : index
    %c0_31 = arith.constant 0 : index
    %c0_32 = arith.constant 0 : index
    %44 = vector.load %arg12[%c0_30, %c0_31, %c0_32] : memref<1x1x8xf32, #tpu.memory_space<vmem>>, vector<1x1x8xf32>
    tpu.vector_store %arg12[%c0_30, %c0_31, %c0_32], %43 {strides = array<i32>} : memref<1x1x8xf32, #tpu.memory_space<vmem>>, vector<1x1x8xf32>,
    return
  }
  func.func @transform_0(%arg0: i32) -> (i32, i32) {
    %c0_i32 = arith.constant 0 : i32
    %c0_i32_0 = arith.constant 0 : i32
    return %arg0, %c0_i32 : i32, i32
  }
  func.func @transform_1(%arg0: i32) -> (i32, i32) {
    %c0_i32 = arith.constant 0 : i32
    %c0_i32_0 = arith.constant 0 : i32
    %c0_i32_1 = arith.constant 0 : i32
    return %c0_i32, %c0_i32_0 : i32, i32
  }
  func.func @transform_2(%arg0: i32) -> (i32, i32) {
    %c0_i32 = arith.constant 0 : i32
    %c0_i32_0 = arith.constant 0 : i32
    %c0_i32_1 = arith.constant 0 : i32
    return %c0_i32, %c0_i32_0 : i32, i32
  }
  func.func @transform_3(%arg0: i32) -> (i32, i32) {
    %c0_i32 = arith.constant 0 : i32
    %c0_i32_0 = arith.constant 0 : i32
    %c0_i32_1 = arith.constant 0 : i32
    return %c0_i32, %c0_i32_0 : i32, i32
  }
  func.func @transform_4(%arg0: i32) -> (i32, i32) {
    %c0_i32 = arith.constant 0 : i32
    %c0_i32_0 = arith.constant 0 : i32
    %c0_i32_1 = arith.constant 0 : i32
    return %c0_i32, %c0_i32_0 : i32, i32
  }
  func.func @transform_5(%arg0: i32) -> (i32, i32) {
    %c0_i32 = arith.constant 0 : i32
    %c0_i32_0 = arith.constant 0 : i32
    %c0_i32_1 = arith.constant 0 : i32
    return %c0_i32, %c0_i32_0 : i32, i32
  }
  func.func @transform_6(%arg0: i32) -> (i32, i32) {
    %c0_i32 = arith.constant 0 : i32
    %c0_i32_0 = arith.constant 0 : i32
    %c0_i32_1 = arith.constant 0 : i32
    return %c0_i32, %c0_i32_0 : i32, i32
  }
  func.func @transform_7(%arg0: i32) -> (i32, i32) {
    %c0_i32 = arith.constant 0 : i32
    %c0_i32_0 = arith.constant 0 : i32
    %c0_i32_1 = arith.constant 0 : i32
    return %c0_i32, %c0_i32_0 : i32, i32
  }
  func.func @transform_8(%arg0: i32) -> (i32, i32) {
    %c0_i32 = arith.constant 0 : i32
    %c0_i32_0 = arith.constant 0 : i32
    %c0_i32_1 = arith.constant 0 : i32
    return %c0_i32, %c0_i32_0 : i32, i32
  }
  func.func @transform_9(%arg0: i32) -> (i32, i32) {
    %c0_i32 = arith.constant 0 : i32
    %c0_i32_0 = arith.constant 0 : i32
    %c0_i32_1 = arith.constant 0 : i32
    return %c0_i32, %c0_i32_0 : i32, i32
  }
  func.func @transform_10(%arg0: i32) -> (i32, i32) {
    %c0_i32 = arith.constant 0 : i32
    %c0_i32_0 = arith.constant 0 : i32
    %c0_i32_1 = arith.constant 0 : i32
    return %c0_i32, %c0_i32_0 : i32, i32
  }
  func.func @transform_11(%arg0: i32) -> (i32, i32, i32) {
    %c0_i32 = arith.constant 0 : i32
    %c0_i32_0 = arith.constant 0 : i32
    %c0_i32_1 = arith.constant 0 : i32
    return %arg0, %c0_i32, %c0_i32_0 : i32, i32, i32
  }
}

</mosaic_0001>

<bundles_post_ra>
// kernel: tpu_custom_call.1
= control target key start
LH: loop header
LB: loop body
LE: loop exit
PB: predicated region body
PF: predicated region fallthrough
CT: control target
= control target key end

     0   :  { %s664_s0 = inlined_call_operand.vmem [shape: bf16[8,150], index: 0, kind: input, shape index: {}]   ;;  %s665_s1 = inlined_call_operand.vmem [shape: bf16[150,64], index: 1, kind: input, shape index: {}]   ;;  %s666_s2 = inlined_call_operand.vmem [shape: f32[1,64], index: 2, kind: input, shape index: {}]   ;;  %s667_s3 = inlined_call_operand.vmem [shape: bf16[64,64], index: 3, kind: input, shape index: {}]   ;;  %s668_s4 = inlined_call_operand.vmem [shape: f32[1,64], index: 4, kind: input, shape index: {}]   ;;  %s669_s5 = inlined_call_operand.vmem [shape: bf16[64,32], index: 5, kind: input, shape index: {}]   ;;  %s670_s6 = inlined_call_operand.vmem [shape: f32[1,32], index: 6, kind: input, shape index: {}]   ;;  %s671_s7 = inlined_call_operand.vmem [shape: bf16[32,32], index: 7, kind: input, shape index: {}]   ;;  %s672_s8 = inlined_call_operand.vmem [shape: f32[1,32], index: 8, kind: input, shape index: {}]   ;;  %s673_s9 = inlined_call_operand.vmem [shape: bf16[1,32], index: 9, kind: input, shape index: {}]   ;;  %s674_s10 = inlined_call_operand.<no memory space> [shape: f32[1,1], index: 10, kind: input, shape index: {}]   ;;  %s675_s11 = inlined_call_operand.hbm [shape: f32[1,1,8], index: 11, kind: output, shape index: {}]  }
   0x1   :  { %v16_v0 = vstv %s674_s10 }
   0x2   :  { %17 = vst [vmem:[#allocation2] sm:$0x1] %v16_v0 }
   0x3   :  { %v466_v1 = vld [vmem:[%s665_s1 + $0x38] sm:$0xff]  ;;  %v61_v2 = vld [vmem:[%s665_s1 + $0x48] sm:$0x7]  ;;  %v465_v3 = vld [vmem:[%s665_s1 + $0x30] sm:$0xff]  ;;  %vm133_vm0 = vcmask 1042432  }
   0x4   :  { %137 = vmatpush.bf16.msra.mxu0 %v466_v1  ;;  %v109_v4 = vunpack.c.l.b16 %v61_v2  ;;  %v42_v5 = vld [vmem:[%s664_s0] sm:$0xff] }
   0x6   :  { %v119_v6 = vpack.c.b16 %v109_v4, %v109_v4 }
   0x7   :  { %18 = vsyncpa [#allocation4], 0  ;;  %v464_v7 = vld [vmem:[%s665_s1 + $0x28] sm:$0xff]  ;;  %v68_v9 = vunpack.c.h.b16 %v42_v5  ;;  %v467_v10 = vld [vmem:[%s665_s1 + $0x40] sm:$0xff]  ;;  %vm129_vm1 = vcmask 179200   ;;  %v67_v16 = vunpack.c.l.b16 %v42_v5  ;;  %vm201_vm2 = vcmask 523264  }
   0x8   :  { %138 = vmatpush.bf16.msra.mxu0 %v465_v3  ;;  %v135_v8 = vsel %vm133_vm0, %v119_v6, 0  ;;  %v463_v11 = vld [vmem:[%s665_s1 + $0x20] sm:$0xff]  ;;  %v462_v13 = vld [vmem:[%s665_s1 + $0x18] sm:$0xff]  ;;  %v461_v14 = vld [vmem:[%s665_s1 + $0x10] sm:$0xff]  ;;  %vm294_vm3 = vcmask 261120   ;;  %v515_v51 = vmov 0  }
   0x9   :  { %156 = vmatpush.bf16.msra.mxu1 %v135_v8  ;;  %v70_v12 = vpack.c.b16 %v68_v9, %v68_v9  ;;  %v460_v15 = vld [vmem:[%s665_s1 + $0x8] sm:$0xff]  ;;  %v459_v17 = vld [vmem:[%s665_s1] sm:$0xff]  ;;  %v69_v18 = vpack.c.b16 %v67_v16, %v67_v16  ;;  %v471_v19 = vld [vmem:[%s667_s3 + $0x18] sm:$0xff]  ;;  %480 = vset.pattern.permute.xlu0 %v515_v51  ;;  %s368_s24 = sshll.u32 %s675_s11, 4  ;;  %vm359_vm7 = vcmask 57344   ;;  %s369_s24 = int_to_ptr.hbm [resolvable:$true] %s368_s24 }
   0xa   :  { %209 = vmatpush.bf16.msra.mxu2 %v471_v19  ;;  %v470_v20 = vld [vmem:[%s667_s3 + $0x10] sm:$0xff]  ;;  %v469_v21 = vld [vmem:[%s667_s3 + $0x8] sm:$0xff]  ;;  %v468_v22 = vld [vmem:[%s667_s3] sm:$0xff] }
   0xb   :  { %v475_v23 = vld [vmem:[%s669_s5 + $0x18] sm:$0xff]  ;;  %v474_v24 = vld [vmem:[%s669_s5 + $0x10] sm:$0xff]  ;;  %v481_v27 = vld [vmem:[%s666_s2] ss:$0 sm:$0xff] }
   0xc   :  { %139 = vmatpush.bf16.msra.mxu0 %v464_v7  ;;  %263 = vmatpush.bf16.msra.mxu3 %v475_v23  ;;  %v473_v34 = vld [vmem:[%s669_s5 + $0x8] sm:$0xff]  ;;  %v472_v35 = vld [vmem:[%s669_s5] sm:$0xff] }
   0xd   :  { %157 = vmatpush.bf16.msra.mxu1 %v467_v10  ;;  %v482_v36 = vld [vmem:[%s668_s4] ss:$0 sm:$0xff]  ;;  %v477_v42 = vld [vmem:[%s671_s7 + $0x8] sm:$0xff] }
   0xe   :  { %210 = vmatpush.bf16.msra.mxu2 %v470_v20  ;;  %v476_v43 = vld [vmem:[%s671_s7] sm:$0xff] }
   0xf   :  { %v483_v44 = vld [vmem:[%s670_s6] ss:$0 sm:$0xff] }
  0x10   :  { %140 = vmatpush.bf16.msra.mxu0 %v463_v11  ;;  %413 = vmatmul.msk.bf16.vlgmr.msra.gmra.mxu1 %vm129_vm1, %v70_v12  ;;  %v314_v50 = vld [vmem:[#allocation2] sm:$0x1] }
  0x11   :  { %264 = vmatpush.bf16.msra.mxu3 %v474_v24  ;;  %304 = vmatpush.bf16.msrb.mxu1 %v477_v42  ;;  %v484_v52 = vld [vmem:[%s672_s8] ss:$0 sm:$0xff]  ;;  %s516_s8 = smov [#allocation3]  }
  0x12   :  { %211 = vmatpush.bf16.msra.mxu2 %v469_v21  ;;  %317 = vperm.xlu0 %480, %v314_v50   ;;  %v312_v59 = vld [vmem:[%s673_s9] sm:$0x1]  ;;  %s366_s9 = sshll.u32 %s516_s8, 4  ;;  %s367_s9 = int_to_ptr.vmem [resolvable:$true] %s366_s9 }
  0x14   :  { %141 = vmatpush.bf16.msra.mxu0 %v462_v13 }
  0x15   :  { %265 = vmatpush.bf16.msra.mxu3 %v473_v34  ;;  %305 = vmatpush.bf16.msrb.mxu1 %v476_v43 }
  0x16   :  { %212 = vmatpush.bf16.msra.mxu2 %v468_v22 }
  0x18   :  { %142 = vmatpush.bf16.msra.mxu0 %v461_v14 }
  0x19   :  { %266 = vmatpush.bf16.msra.mxu3 %v472_v35 }
  0x1c   :  { %143 = vmatpush.bf16.msra.mxu0 %v460_v15 }
  0x20   :  { %144 = vmatpush.bf16.msra.mxu0 %v459_v17 }
  0x23   :  { %145 = vmatmul.bf16.vlgmr.msra.gmra.mxu0 %v69_v18 }
  0x84   :  { %v318_v60 = vpop.permute.xlu0 %317 }
  0x85   :  { %v320_v61 = vperm.slane %v318_v60, 0 }
  0x8d   :  { %v159_v25 = vpop.f32.mrf.mxu1 }
  0x95   :  { %v161_v26 = vpop.f32.mrf.mxu1 }
  0xa0   :  { %v146_v28 = vpop.f32.mrf.mxu0 }
  0xa1   :  { %v147_v29 = vadd.f32 %v481_v27, %v146_v28 }
  0xa3   :  { %v160_v30 = vadd.f32 %v159_v25, %v147_v29 }
  0xa5   :  { %v163_v31 = vmax.f32 %v160_v30, 0.0 }
  0xa7   :  { %v164_v32 = vpack.c.bf16 %v163_v31, %v163_v31 }
  0xa8   :  { %v148_v33 = vpop.f32.mrf.mxu0 }
  0xa9   :  { %430 = vmatmul.msk.bf16.vlgmr.msra.gmra.mxu2 %vm201_vm2, %v164_v32 }
 0x12c   :  { %v214_v37 = vpop.f32.mrf.mxu2 }
 0x12d   :  { %v215_v38 = vadd.f32 %v482_v36, %v214_v37 }
 0x12f   :  { %v218_v39 = vmax.f32 %v215_v38, 0.0 }
 0x131   :  { %v219_v40 = vpack.c.bf16 %v218_v39, %v218_v39 }
 0x133   :  { %447 = vmatmul.msk.bf16.vlgmr.msra.gmra.mxu3 %vm201_vm2, %v219_v40 }
 0x134   :  { %v216_v41 = vpop.f32.mrf.mxu2 }
 0x1b6   :  { %v268_v45 = vpop.f32.mrf.mxu3 }
 0x1b7   :  { %v269_v46 = vadd.f32 %v483_v44, %v268_v45 }
 0x1b9   :  { %v272_v47 = vmax.f32 %v269_v46, 0.0 }
 0x1bb   :  { %v273_v48 = vpack.c.bf16 %v272_v47, %v272_v47 }
 0x1bd   :  { %456 = vmatmul.msk.bf16.vlgmr.msrb.gmra.mxu1 %vm294_vm3, %v273_v48 }
 0x1be   :  { %v270_v49 = vpop.f32.mrf.mxu3 }
 0x23a   :  { %v307_v53 = vpop.f32.mrf.mxu1 }
 0x23b   :  { %v308_v54 = vadd.f32 %v484_v52, %v307_v53 }
 0x23d   :  { %v311_v55 = vmax.f32 %v308_v54, 0.0 }
 0x23f   :  { %v313_v56 = vpack.c.bf16 %v311_v55, %v311_v55 }
 0x241   :  { %v325_v57 = vsel %vm294_vm3, %v313_v56, 0 }
 0x242   :  { %v309_v58 = vpop.f32.mrf.mxu1  ;;  %334 = vmatpush.bf16.xpose.msrb.mxu2 %v325_v57 }
 0x249   :  { %457 = vmatmul.msk.bf16.vlgmr.msrb.gmra.mxu2 %vm294_vm3, %v312_v59 }
 0x2cc   :  { %v336_v62 = vpop.f32.mrf.mxu2 }
 0x2cd   :  { %v337_v63 = vadd.f32 %v336_v62, %v320_v61 }
 0x2cf   :  { %v458_v0 = vmul.f32 -1.442695, %v337_v63 }
 0x2d1   :  { %485 = vpow2.f32 %v458_v0 }
 0x2d4   :  { %v338_v1 = vpop.f32.mrf.mxu2 }
 0x2d7   :  { %v486_v2 = vpop.eup %485 }
 0x2d8   :  { %v343_v3 = vadd.f32 1.0, %v486_v2 }
 0x2da   :  { %487 = vrcp.f32 %v343_v3  ;;  %v355_v7 = vand.u32 2147483648, %v343_v3  ;;  %v353_v9 = vand.u32 2147483647, %v343_v3  ;;  %vm349_vm5 = vweird.f32 %v343_v3 }
 0x2dc   :  { %v356_v11 = vor.u32 1.1754944e-38, %v355_v7  ;;  %vm354_vm8 = vcmp.eq.f32.partialorder %v353_v9, 8.507059e+37 }
 0x2e0   :  { %v488_v4 = vpop.eup %487 }
 0x2e1   :  { %v345_v5 = vmul.f32 %v488_v4, %v343_v3  ;;  %vm350_vm4 = vweird.f32 %v488_v4 }
 0x2e2   :  { %vm351_vm6 = vmor %vm349_vm5, %vm350_vm4 }
 0x2e3   :  { %v346_v6 = vsub.f32 1.0, %v345_v5 }
 0x2e5   :  { %v347_v8 = vmul.f32 %v488_v4, %v346_v6 }
 0x2e7   :  { %v348_v10 = vadd.f32 %v488_v4, %v347_v8 }
 0x2e9   :  { %v352_v12 = vsel %vm351_vm6, %v488_v4, %v348_v10 }
 0x2ea   :  { %v357_v13 = vsel %vm354_vm8, %v356_v11, %v352_v12 }
 0x2eb   :  { %360 = vst.msk [vmem:[#allocation3] sm:$0x1] %vm359_vm7, %v357_v13 }
 0x2ec   :  { %371 = dma.vmem_to_hbm [thread:$0]  %s367_s9, 16, %s369_s24, [#allocation4]  }
 0x2ed   :  { %513 = dma.done.wait [#allocation4], 16  }
 0x2ee   :  { %514 = vsyncadd [#allocation4], 4294967280 }
 0x2ef   :  { %376 = vsyncpa [#allocation4], 1 }

</bundles_post_ra>
